<compile_context>
chip_gen: v7x
topology: tpu7x:2x2x1
jax: 0.10.0
libtpu: 0.0.40
codegen_flags: <defaults>
</compile_context>

<pallas_src>
import functools

import numpy as np
import jax
import jax.numpy as jnp
from jax.experimental import pallas as pl
from jax.experimental.pallas import tpu as pltpu


# -----------------------------------------------------------------------------
# Kernels: whole-block VMEM copies into static offsets of the output tile.
# -----------------------------------------------------------------------------
def _concat3d_kernel(*refs, offsets, sizes):
    """refs = (x_0, ..., x_{k-1}, out); blocks are (t_outer, C_i, ti)."""
    o_ref = refs[-1]
    for x_ref, off, c in zip(refs[:-1], offsets, sizes):
        o_ref[:, off:off + c, :] = x_ref[...].astype(o_ref.dtype)


def _concat2d_kernel(*refs, offsets, sizes):
    """refs = (x_0, ..., x_{k-1}, out); blocks are (t_outer, C_i*inner)."""
    o_ref = refs[-1]
    for x_ref, off, c in zip(refs[:-1], offsets, sizes):
        o_ref[:, off:off + c] = x_ref[...].astype(o_ref.dtype)


# -----------------------------------------------------------------------------
# Tiling helpers.
# -----------------------------------------------------------------------------
def _divisors_desc(n):
    ds = set()
    i = 1
    while i * i <= n:
        if n % i == 0:
            ds.add(i)
            ds.add(n // i)
        i += 1
    return sorted(ds, reverse=True)


def _vmem_budget():
    """Returns (double-buffered per-step tile-set budget, scoped vmem limit)."""
    cap = 64 * 1024 * 1024          # conservative default: v7x per-TC physical
    try:                            # v5e / v6e report 128 MiB -> bigger tiles
        cap = int(pltpu.get_tpu_info().vmem_capacity_bytes)
    except Exception:
        pass
    budget = min(cap // 4, 24 * 1024 * 1024)
    vmem_limit = min(cap // 2, budget * 2 + 8 * 1024 * 1024)
    return budget, max(vmem_limit, 16 * 1024 * 1024)


# -----------------------------------------------------------------------------
# Wrapper: equivalent of the PyTorch module `Concat.forward` (torch.cat).
# -----------------------------------------------------------------------------
def concat(xs, dimension=1):
    xs = [jnp.asarray(x) for x in xs]
    nd = xs[0].ndim
    d = dimension % nd

    base = xs[0].shape
    for x in xs:
        assert x.ndim == nd, "all inputs must have the same rank"
        assert x.shape[:d] == base[:d] and x.shape[d + 1:] == base[d + 1:], (
            "all non-concat dims must match")

    out_dtype = jnp.result_type(*[x.dtype for x in xs])
    out_item = np.dtype(out_dtype).itemsize

    outer = int(np.prod(base[:d], dtype=np.int64)) if d > 0 else 1
    inner = int(np.prod(base[d + 1:], dtype=np.int64)) if d + 1 < nd else 1
    sizes_all = [int(x.shape[d]) for x in xs]
    c_total = int(sum(sizes_all))
    offsets_all = [int(o) for o in np.cumsum([0] + sizes_all[:-1])]
    out_full_shape = base[:d] + (c_total,) + base[d + 1:]

    if c_total == 0 or outer == 0 or inner == 0:
        return jnp.zeros(out_full_shape, out_dtype)

    # Drop zero-width operands (torch.cat allows them; they contribute nothing).
    triples = [(x, o, c) for x, o, c in zip(xs, offsets_all, sizes_all) if c > 0]
    xs, offsets, sizes = map(list, zip(*triples))

    itemsizes = [x.dtype.itemsize for x in xs]
    in_row_bytes = sum(c * it for c, it in zip(sizes, itemsizes))   # per inner elem
    out_row_bytes = c_total * out_item                               # per inner elem

    budget, vmem_limit = _vmem_budget()
    total_bytes = (sum(int(x.size) * it for x, it in zip(xs, itemsizes))
                   + outer * c_total * inner * out_item)
    cost = pl.CostEstimate(flops=0, transcendentals=0, bytes_accessed=total_bytes)

    # ---------------- 3-D path: inner is lane-aligned (multiple of 128) -------
    if inner % 128 == 0:
        def fp(t_outer, ti):  # double-buffered per-step VMEM footprint
            return 2 * t_outer * ti * (in_row_bytes + out_row_bytes)

        ti = next((k * 128 for k in _divisors_desc(inner // 128)
                   if fp(1, k * 128) <= budget), None)
        if ti is not None:
            t_outer = next(t for t in _divisors_desc(outer) if fp(t, ti) <= budget)

            # Keep >= 2 grid steps along a parallel axis so both v7x TCs work.
            if outer == t_outer and inner == ti:
                if ti % 256 == 0:
                    ti //= 2
                else:
                    smaller = [t for t in _divisors_desc(outer) if t < t_outer]
                    if smaller:
                        t_outer = smaller[0]

            grid = (outer // t_outer, inner // ti)
            xs3 = [x.reshape(outer, c, inner) for x, c in zip(xs, sizes)]
            in_specs = [pl.BlockSpec((t_outer, c, ti), lambda o, j: (o, 0, j))
                        for c in sizes]
            out_spec = pl.BlockSpec((t_outer, c_total, ti), lambda o, j: (o, 0, j))

            out3 = pl.pallas_call(
                functools.partial(_concat3d_kernel, offsets=offsets, sizes=sizes),
                out_shape=jax.ShapeDtypeStruct((outer, c_total, inner), out_dtype),
                grid=grid,
                in_specs=in_specs,
                out_specs=out_spec,
                compiler_params=pltpu.CompilerParams(
                    dimension_semantics=("parallel", "parallel"),
                    vmem_limit_bytes=int(vmem_limit)),
                cost_estimate=cost,
            )(*xs3)
            return out3.reshape(out_full_shape)

        # c_total so large that even ti=128 overflows the budget.
        # TODO(synk): tile the channel axis inside the kernel for huge c_total.
        return jnp.concatenate([x.astype(out_dtype) for x in xs], axis=d)

    # ---------------- 2-D fused path: inner not 128-divisible -----------------
    # Fold `inner` into the concat axis so the fast (lane) dim is dense;
    # concat is then a contiguous row-chunk copy:
    #   out[r, off*inner : (off+c)*inner] = x[r, :]
    f_sizes = [c * inner for c in sizes]
    f_offsets = [o * inner for o in offsets]
    f_total = c_total * inner

    def fp2(t_outer):
        return 2 * t_outer * inner * (in_row_bytes + out_row_bytes)

    cands = [t for t in _divisors_desc(outer) if t == outer or t % 8 == 0]
    t_outer = next((t for t in cands if fp2(t) <= budget), None)
    if t_outer is None:
        # Fused rows too large for an un-tiled block.
        # TODO(synk): pad `inner` up to a multiple of 128 and use the tiled
        # 3-D path for huge, non-128-divisible inner extents.
        return jnp.concatenate([x.astype(out_dtype) for x in xs], axis=d)

    if outer == t_outer:            # give both v7x TCs some work if possible
        smaller = [t for t in cands if t < t_outer]
        if smaller:
            t_outer = smaller[0]

    grid = (outer // t_outer,)
    xs2 = [x.reshape(outer, fc) for x, fc in zip(xs, f_sizes)]
    in_specs = [pl.BlockSpec((t_outer, fc), lambda o: (o, 0)) for fc in f_sizes]
    out_spec = pl.BlockSpec((t_outer, f_total), lambda o: (o, 0))

    out2 = pl.pallas_call(
        functools.partial(_concat2d_kernel, offsets=f_offsets, sizes=f_sizes),
        out_shape=jax.ShapeDtypeStruct((outer, f_total), out_dtype),
        grid=grid,
        in_specs=in_specs,
        out_specs=out_spec,
        compiler_params=pltpu.CompilerParams(
            dimension_semantics=("parallel",),
            vmem_limit_bytes=int(vmem_limit)),
        cost_estimate=cost,
    )(*xs2)
    return out2.reshape(out_full_shape)


if __name__ == "__main__":
    key = jax.random.PRNGKey(0)
    k0, k1, k2, k3 = jax.random.split(key, 4)

    # NCHW feature maps, channel concat (the YOLO backbone use case).
    x0 = jax.random.normal(k0, (2, 4, 16, 16), jnp.float32)
    x1 = jax.random.normal(k1, (2, 8, 16, 16), jnp.float32)
    x2 = jax.random.normal(k2, (2, 4, 16, 16), jnp.float32)
    xs = [x0, x1, x2]

    out = jax.block_until_ready(concat(xs, dimension=1))
    assert out.shape == (2, 16, 16, 16)
    ref = jnp.concatenate(xs, axis=1)
    np.testing.assert_array_equal(np.asarray(out), np.asarray(ref))

    # Last-axis concat: exercises the lane-major fused 2-D path.
    out_last = jax.block_until_ready(concat([x0, x0], dimension=-1))
    np.testing.assert_array_equal(
        np.asarray(out_last),
        np.asarray(jnp.concatenate([x0, x0], axis=-1)))

    # Mixed dtypes: the cast to the promoted dtype happens inside the kernel.
    xb = jax.random.normal(k3, (2, 4, 16, 16), jnp.float32).astype(jnp.bfloat16)
    out_mix = jax.block_until_ready(concat([x0, xb], dimension=1))
    assert out_mix.dtype == jnp.float32
    ref_mix = jnp.concatenate([x0, xb.astype(jnp.float32)], axis=1)
    np.testing.assert_array_equal(np.asarray(out_mix), np.asarray(ref_mix))

    print("KERNEL_OK")
</pallas_src>

<mosaic_0001>
module attributes {stable_mosaic.version = 11 : i64} {
  func.func @_concat3d_kernel(%arg0: i32, %arg1: i32, %arg2: memref<2x4x128xf32, #tpu.memory_space<vmem>>, %arg3: memref<2x8x128xf32, #tpu.memory_space<vmem>>, %arg4: memref<2x4x128xf32, #tpu.memory_space<vmem>>, %arg5: memref<2x16x128xf32, #tpu.memory_space<vmem>>) attributes {dimension_semantics = [#tpu.dimension_semantics<parallel>, #tpu.dimension_semantics<parallel>], iteration_bounds = array<i64: 1, 2>, scalar_prefetch = 0 : i64, scratch_operands = 0 : i64, tpu.core_type = #tpu.core_type<tc>, window_params = [{transform_indices = @transform_0, window_bounds = array<i64: 2, 4, 128>}, {transform_indices = @transform_1, window_bounds = array<i64: 2, 8, 128>}, {transform_indices = @transform_2, window_bounds = array<i64: 2, 4, 128>}, {transform_indices = @transform_3, window_bounds = array<i64: 2, 16, 128>}]} {
    %c0 = arith.constant 0 : index
    %c0_0 = arith.constant 0 : index
    %c0_1 = arith.constant 0 : index
    %0 = vector.load %arg2[%c0, %c0_0, %c0_1] : memref<2x4x128xf32, #tpu.memory_space<vmem>>, vector<2x4x128xf32>
    %c0_2 = arith.constant 0 : index
    %c0_3 = arith.constant 0 : index
    %c0_4 = arith.constant 0 : index
    %1 = vector.load %arg5[%c0_2, %c0_3, %c0_4] : memref<2x16x128xf32, #tpu.memory_space<vmem>>, vector<2x4x128xf32>
    tpu.vector_store %arg5[%c0_2, %c0_3, %c0_4], %0 {strides = array<i32>} : memref<2x16x128xf32, #tpu.memory_space<vmem>>, vector<2x4x128xf32>,
    %c0_5 = arith.constant 0 : index
    %c0_6 = arith.constant 0 : index
    %c0_7 = arith.constant 0 : index
    %2 = vector.load %arg3[%c0_5, %c0_6, %c0_7] : memref<2x8x128xf32, #tpu.memory_space<vmem>>, vector<2x8x128xf32>
    %c0_8 = arith.constant 0 : index
    %c4 = arith.constant 4 : index
    %c0_9 = arith.constant 0 : index
    %3 = vector.load %arg5[%c0_8, %c4, %c0_9] : memref<2x16x128xf32, #tpu.memory_space<vmem>>, vector<2x8x128xf32>
    tpu.vector_store %arg5[%c0_8, %c4, %c0_9], %2 {strides = array<i32>} : memref<2x16x128xf32, #tpu.memory_space<vmem>>, vector<2x8x128xf32>,
    %c0_10 = arith.constant 0 : index
    %c0_11 = arith.constant 0 : index
    %c0_12 = arith.constant 0 : index
    %4 = vector.load %arg4[%c0_10, %c0_11, %c0_12] : memref<2x4x128xf32, #tpu.memory_space<vmem>>, vector<2x4x128xf32>
    %c0_13 = arith.constant 0 : index
    %c12 = arith.constant 12 : index
    %c0_14 = arith.constant 0 : index
    %5 = vector.load %arg5[%c0_13, %c12, %c0_14] : memref<2x16x128xf32, #tpu.memory_space<vmem>>, vector<2x4x128xf32>
    tpu.vector_store %arg5[%c0_13, %c12, %c0_14], %4 {strides = array<i32>} : memref<2x16x128xf32, #tpu.memory_space<vmem>>, vector<2x4x128xf32>,
    return
  }
  func.func @transform_0(%arg0: i32, %arg1: i32) -> (i32, i32, i32) {
    %c0_i32 = arith.constant 0 : i32
    %c0_i32_0 = arith.constant 0 : i32
    return %arg0, %c0_i32, %arg1 : i32, i32, i32
  }
  func.func @transform_1(%arg0: i32, %arg1: i32) -> (i32, i32, i32) {
    %c0_i32 = arith.constant 0 : i32
    %c0_i32_0 = arith.constant 0 : i32
    return %arg0, %c0_i32, %arg1 : i32, i32, i32
  }
  func.func @transform_2(%arg0: i32, %arg1: i32) -> (i32, i32, i32) {
    %c0_i32 = arith.constant 0 : i32
    %c0_i32_0 = arith.constant 0 : i32
    return %arg0, %c0_i32, %arg1 : i32, i32, i32
  }
  func.func @transform_3(%arg0: i32, %arg1: i32) -> (i32, i32, i32) {
    %c0_i32 = arith.constant 0 : i32
    %c0_i32_0 = arith.constant 0 : i32
    return %arg0, %c0_i32, %arg1 : i32, i32, i32
  }
}

</mosaic_0001>

<bundles_post_ra>
// kernel: tpu_custom_call.1
= control target key start
LH: loop header
LB: loop body
LE: loop exit
PB: predicated region body
PF: predicated region fallthrough
CT: control target
= control target key end

     0   :  { %s1040_s0 = inlined_call_operand.hbm [shape: f32[2,4,256], index: 0, kind: input, shape index: {}]   ;;  %s1041_s1 = inlined_call_operand.hbm [shape: f32[2,8,256], index: 1, kind: input, shape index: {}]   ;;  %s1042_s2 = inlined_call_operand.hbm [shape: f32[2,4,256], index: 2, kind: input, shape index: {}]   ;;  %s1043_s3 = inlined_call_operand.hbm [shape: f32[2,16,256], index: 3, kind: output, shape index: {}]  }
   0x1   :  { %1050 = sst [smem:[#allocation14_spill]] %s1040_s0 }
   0x2   :  { %1051 = sst [smem:[#allocation15_spill]] %s1041_s1 }
   0x3   :  { %8 = vsyncpa [#allocation3], 0 }
   0x4   :  { %10 = vsyncpa [#allocation3 + $0x1], 0 }
   0x5   :  { %11 = vsyncpa [#allocation6], 0 }
   0x6   :  { %13 = vsyncpa [#allocation6 + $0x1], 0 }
   0x7   :  { %14 = vsyncpa [#allocation4], 0 }
   0x8   :  { %16 = vsyncpa [#allocation4 + $0x1], 0  ;;  %s765_s12 = smov 0   ;;  %s767_s13 = smov 0  }
   0x9   :  { %s769_s14 = smov 0   ;;  %s771_s15 = smov 0  }
   0xa   :  { %s773_s16 = smov 0   ;;  %s775_s17 = smov 0  }
   0xb LB: > { %s796_s18 = sadd.s32 4294967295, %s731_s17   ;;  %s457_s19 = sadd.s32 4294967294, %s731_s17   ;;  %s731_s17 = sphi %s775_s17, %s22_s17   ;;  %s727_s16 = sphi %s773_s16, %s1077_s16   ;;  %s723_s15 = sphi %s771_s15, %s1076_s15   ;;  %s719_s14 = sphi %s769_s14, %s1075_s14   ;;  %s715_s13 = sphi %s767_s13, %s1074_s13   ;;  %s711_s12 = sphi %s765_s12, %s1073_s12  }
   0xc   : > { %s31_s20 = sadd.s32 1, %s727_s16  ;;  %s43_s21 = sadd.s32 1, %s719_s14 }
   0xd   : > { %p32_p0 = scmp.ge.s32.totalorder %s31_s20, 2  ;;  %p50_p1 = scmp.ne.s32.totalorder %s719_s14, %s715_s13 }
   0xe   : > { %p51_p2 = scmp.eq.s32.totalorder %s731_s17, 0  ;;  %p56_p3 = scmp.ne.s32.totalorder %s715_s13, %s711_s12 }
   0xf   : > { %s1079_s20 = smov (%p32_p0, %s31_s20), 0  ;;  %p57_p5 = scmp.eq.s32.totalorder %s796_s18, 0 }
  0x10   : > { %1052 = sst [smem:[#allocation12_spill]] %s1079_s20  ;;  %p808_p4 = por %p51_p2, %p50_p1 }
  0x11   : > { %s39_s23 = ssub.s32 %s727_s16, %s1079_s20  ;;  %p138_p6 = scmp.eq.s32.totalorder %s796_s18, 1 }
  0x12   : > { %p41_p7 = scmp.eq.s32.totalorder %s39_s23, 0  ;;  %p816_p8 = por %p57_p5, %p56_p3 }
  0x13   : > { %p820_p9 = por %p138_p6, %p50_p1  ;;  %p144_p10 = scmp.eq.s32.totalorder %s457_s19, 1 }
  0x14   : > { %s1054_s24 = scalar_select %p816_p8, 1, 0 }
  0x15   : > { %s1055_s25 = scalar_select %p820_p9, 1, 0 }
  0x16   : > { %s825_s26 = scalar_select %p41_p7, %s719_s14, %s43_s21  }
  0x17   : > { %p827_p11 = por %p144_p10, %p56_p3  ;;  %p497_p13 = scmp.lt.s32.totalorder %s731_s17, 2 }
  0x18   : > { %1056 = sst [smem:[#allocation13_spill]] %s825_s26  ;;  %s834_s28 = sand.u32 1, %s719_s14  }
  0x19   : > { %s1057_s27 = scalar_select %p827_p11, 1, 0 }
  0x1a   : > { %s187_s29 = sand.u32 1, %s731_s17   ;;  %p839_p0 = pnand %p497_p13, %p808_p4 }
  0x1b   : > { %s462_s4 = sshll.u32 %s834_s28, 4  ;;  %s463_s5 = sshll.u32 %s727_s16, 7 }
  0x1c   : > { %s1059_s1 = sld [smem:[#allocation15_spill]]  ;;  %s191_s9 = scalar_lea.vmem [#allocation5], %s462_s4 }
  0x1d   : > { %s200_s10 = sshll.u32 %s191_s9, 4  ;;  %s853_s11 = scalar_lea.sflag [#allocation6], %s187_s29  ;;  %s850_s10 = int_to_ptr.vmem [resolvable:$true] %s200_s10 }
  0x1e   : > { %p859_p3 = pneg %p839_p0 }
  0x22   : > { %s848_s8 = scalar_lea.hbm %s1059_s1, %s463_s5  ;;  %s560_s4 = scalar_lea.hbm %s1059_s1, 512 }
  0x23   : > { %s555_s19 = scalar_lea.hbm %s848_s8, 256  ;;  %p561_p6 = scmp.lt.u32.totalorder %s848_s8, %s1059_s1 }
  0x24   : > { %p556_p2 = scmp.ne.s32.totalorder %s848_s8, %s555_s19  ;;  %p562_p7 = scmp.lt.u32.totalorder %s560_s4, %s555_s19 }
  0x25   : > { %p564_p13 = scmp.lt.u32.totalorder %s555_s19, %s848_s8 }
  0x26   : > { %p558_p4 = pnand %p859_p3, %p556_p2  ;;  %p563_p10 = por %p562_p7, %p561_p6 }
  0x28   : > { %p559_p5 = pneg %p558_p4  ;;  %p565_p12 = por %p564_p13, %p563_p10 }
  0x2a   : > { %p566_p1 = pnand %p565_p12, %p559_p5 }
  0x2c   : > { %569 = shalt.err (!%p566_p1)
}
  0x2d   : > { %s570_s29 = scalar_lea.vmem %s850_s10, 256  ;;  %s733_s7 = smov [#allocation5]  }
  0x2e   : > { %p571_p2 = scmp.ne.s32.totalorder %s850_s10, %s570_s29  ;;  %s575_s9 = sshll.u32 %s733_s7, 4  ;;  %s576_s9 = int_to_ptr.vmem [resolvable:$false] %s575_s9 }
  0x2f   : > { %s577_s22 = scalar_lea.vmem %s576_s9, 512  ;;  %p578_p9 = scmp.lt.s32.totalorder %s850_s10, %s576_s9 }
  0x30   : > { %p573_p4 = pnand %p571_p2, %p859_p3  ;;  %p579_p8 = scmp.lt.s32.totalorder %s577_s22, %s570_s29 }
  0x32   : > { %p574_p11 = pneg %p573_p4  ;;  %p580_p6 = por %p579_p8, %p578_p9 }
  0x34   : > { %p581_p7 = pnand %p580_p6, %p574_p11 }
  0x36   : > { %584 = shalt.err (!%p581_p7)
}
  0x37   : > { %s734_s19 = smov 256   ;;  %s1046_s23 = smov 128  }
  0x38   : > { %s736_s4 = smov 8   ;;  %p231_p8 = scmp.lt.s32.totalorder %s731_s17, 3 }
  0x39   : > { %489 = dma.hbm_to_vmem [thread:$0]  (!%p839_p0), %s848_s8, 256, %s850_s10, %s853_s11, %s734_s19, %s1046_s23, %s736_s4  }
  0x3a   : > { %p1061_p9 = scmp.ge.s32.totalorder %s731_s17, 1  ;;  %s460_s6 = sshll.u32 %s834_s28, 3 }
  0x3b   : > { %s1048_s29 = sshll.u32 %s727_s16, 6  ;;  %s1063_s0 = sld [smem:[#allocation14_spill]] }
  0x3c   : > { %p887_p11 = pnand %p1061_p9, %p231_p8  ;;  %s168_s8 = scalar_lea.vmem [#allocation2], %s460_s6 }
  0x3d   : > { %s177_s10 = sshll.u32 %s168_s8, 4  ;;  %s165_s19 = scalar_lea.sflag [#allocation3], %s834_s28  ;;  %s902_s10 = int_to_ptr.vmem [resolvable:$true] %s177_s10 }
  0x3e   : > { %s1062_s5 = scalar_select %p887_p11, 1, 0 }
  0x41   : > { %s898_s22 = scalar_lea.hbm %s1063_s0, %s1048_s29  ;;  %s590_s7 = scalar_lea.hbm %s1063_s0, 256 }
  0x42   : > { %s585_s4 = scalar_lea.hbm %s898_s22, 128  ;;  %p591_p10 = scmp.lt.u32.totalorder %s898_s22, %s1063_s0 }
  0x43   : > { %p586_p12 = scmp.ne.s32.totalorder %s898_s22, %s585_s4  ;;  %p592_p13 = scmp.lt.u32.totalorder %s590_s7, %s585_s4 }
  0x44   : > { %p594_p4 = scmp.lt.u32.totalorder %s585_s4, %s898_s22 }
  0x45   : > { %p588_p1 = pnand %p586_p12, %p859_p3  ;;  %p593_p2 = por %p592_p13, %p591_p10 }
  0x47   : > { %p589_p5 = pneg %p588_p1  ;;  %p595_p6 = por %p594_p4, %p593_p2 }
  0x49   : > { %p596_p7 = pnand %p595_p6, %p589_p5 }
  0x4b   : > { %599 = shalt.err (!%p596_p7)
}
  0x4c   : > { %s600_s8 = scalar_lea.vmem %s902_s10, 128  ;;  %s737_s1 = smov [#allocation2]  }
  0x4d   : > { %p601_p8 = scmp.ne.s32.totalorder %s902_s10, %s600_s8  ;;  %s605_s23 = sshll.u32 %s737_s1, 4  ;;  %s606_s23 = int_to_ptr.vmem [resolvable:$false] %s605_s23 }
  0x4e   : > { %s607_s29 = scalar_lea.vmem %s606_s23, 256  ;;  %p608_p1 = scmp.lt.s32.totalorder %s902_s10, %s606_s23 }
  0x4f   : > { %p603_p9 = pnand %p601_p8, %p859_p3  ;;  %p609_p11 = scmp.lt.s32.totalorder %s607_s29, %s600_s8 }
  0x51   : > { %p604_p12 = pneg %p603_p9  ;;  %p610_p10 = por %p609_p11, %p608_p1 }
  0x53   : > { %p611_p13 = pnand %p610_p10, %p604_p12 }
  0x55   : > { %614 = shalt.err (!%p611_p13)
}
  0x56   : > { %s738_s4 = smov 64   ;;  %s739_s7 = smov 4  }
  0x57   : > { %s1064_s9 = smov 128   ;;  %s1065_s1 = sshll.u32 %s727_s16, 6 }
  0x58   : > { %486 = dma.hbm_to_vmem [thread:$0]  (!%p839_p0), %s898_s22, 128, %s902_s10, %s165_s19, %s1064_s9, %s738_s4, %s739_s7  }
  0x59   : > { %s936_s29 = scalar_lea.hbm %s1042_s2, %s1065_s1  ;;  %s214_s0 = scalar_lea.vmem [#allocation7], %s460_s6 }
  0x5a   : > { %s223_s20 = sshll.u32 %s214_s0, 4  ;;  %s615_s26 = scalar_lea.hbm %s936_s29, 128  ;;  %s940_s20 = int_to_ptr.vmem [resolvable:$true] %s223_s20 }
  0x5b   : > { %p616_p11 = scmp.ne.s32.totalorder %s936_s29, %s615_s26  ;;  %s620_s19 = scalar_lea.hbm %s1042_s2, 256 }
  0x5c   : > { %p621_p4 = scmp.lt.u32.totalorder %s936_s29, %s1042_s2  ;;  %p622_p6 = scmp.lt.u32.totalorder %s620_s19, %s615_s26 }
  0x5d   : > { %p618_p5 = pnand %p616_p11, %p859_p3  ;;  %p624_p8 = scmp.lt.u32.totalorder %s615_s26, %s936_s29 }
  0x5e   : > { %p623_p7 = por %p622_p6, %p621_p4 }
  0x5f   : > { %p619_p2 = pneg %p618_p5 }
  0x60   : > { %p625_p9 = por %p624_p8, %p623_p7 }
  0x62   : > { %p626_p12 = pnand %p625_p9, %p619_p2 }
  0x64   : > { %629 = shalt.err (!%p626_p12)
}
  0x65   : > { %s630_s0 = scalar_lea.vmem %s940_s20, 128  ;;  %s740_s28 = smov [#allocation7]  }
  0x66   : > { %p631_p1 = scmp.ne.s32.totalorder %s940_s20, %s630_s0  ;;  %s635_s6 = sshll.u32 %s740_s28, 4  ;;  %s636_s6 = int_to_ptr.vmem [resolvable:$false] %s635_s6 }
  0x67   : > { %s637_s23 = scalar_lea.vmem %s636_s6, 256  ;;  %p638_p11 = scmp.lt.s32.totalorder %s940_s20, %s636_s6 }
  0x68   : > { %p633_p10 = pnand %p631_p1, %p859_p3  ;;  %p639_p5 = scmp.lt.s32.totalorder %s637_s23, %s630_s0 }
  0x6a   : > { %p634_p13 = pneg %p633_p10  ;;  %p640_p4 = por %p639_p5, %p638_p11 }
  0x6c   : > { %p641_p6 = pnand %p640_p4, %p634_p13 }
  0x6e   : > { %644 = shalt.err (!%p641_p6)
}
  0x6f   : > { %492 = dma.hbm_to_vmem [thread:$0]  (!%p839_p0), %s936_s29, 128, %s940_s20, %s853_s11, %s1064_s9, %s738_s4, %s739_s7  }
  0x70   : > { %p1066_p3 = scmp.ne.s32.totalorder %s1062_s5, 0 }
  0x71   : > { %s970_s26 = sand.u32 (!%p1066_p3), 1, %s715_s13   ;;  %p1067_p2 = scmp.ne.s32.totalorder (!%p1066_p3), %s1054_s24, 0 }
  0x72   : > { %235 = sbr.rel (%p1066_p3) target bundleno = 155 (0x9b), region = 32  ;;  %s467_s21 = sshll.u32 (!%p1066_p3), %s970_s26, 3 }
  0x73   : > { %s238_s22 = scalar_lea.sflag (!%p1066_p3), [#allocation3], %s970_s26  ;;  %s241_s10 = scalar_lea.vmem (!%p1066_p3), [#allocation2], %s467_s21 }
  0x79   : > { %698 = dma.done.wait (%p1067_p2), %s238_s22, 128  }
  0x7a   : > { %700 = vsyncadd (%p1067_p2), %s238_s22, 4294967168  ;;  %s246_s20 = sand.u32 1, %s796_s18   ;;  %s468_s30 = sshll.u32 %s970_s26, 4 }
  0x7b   : > { %s247_s11 = scalar_lea.sflag [#allocation6], %s246_s20  ;;  %s250_s5 = scalar_lea.vmem [#allocation5], %s468_s30 }
  0x7c   : > { %702 = dma.done.wait (%p1067_p2), %s247_s11, 384  }
  0x7d   : > { %704 = vsyncadd (%p1067_p2), %s247_s11, 4294966912  ;;  %s470_s4 = sshll.u32 %s970_s26, 5  ;;  %s472_s29 = sshll.u32 %s723_s15, 7  ;;  %v296_v0 = vld [vmem:[%s241_s10] sm:$0xf]  ;;  %v300_v2 = vld [vmem:[%s250_s5] sm:$0xff] }
  0x7e   : > { %s291_s7 = scalar_lea.vmem [#allocation8], %s470_s4  ;;  %v297_v1 = vld [vmem:[%s241_s10 + $0x4] sm:$0xf]  ;;  %s991_s24 = scalar_lea.hbm %s1043_s3, %s472_s29 }
  0x7f   : > { %s324_s9 = sshll.u32 %s291_s7, 4  ;;  %298 = vst [vmem:[%s291_s7] sm:$0xf] %v296_v0  ;;  %299 = vst [vmem:[%s291_s7 + $0x10] sm:$0xf] %v297_v1  ;;  %v301_v3 = vld [vmem:[%s250_s5 + $0x8] sm:$0xff]  ;;  %s259_s15 = scalar_lea.vmem [#allocation7], %s467_s21  ;;  %s986_s9 = int_to_ptr.vmem [resolvable:$true] %s324_s9 }
  0x80   : > { %302 = vst [vmem:[%s291_s7 + $0x4] sm:$0xff] %v300_v2  ;;  %v304_v4 = vld [vmem:[%s259_s15] sm:$0xf]  ;;  %v305_v5 = vld [vmem:[%s259_s15 + $0x4] sm:$0xf]  ;;  %303 = vst [vmem:[%s291_s7 + $0x14] sm:$0xff] %v301_v3 }
  0x81   : > { %306 = vst [vmem:[%s291_s7 + $0xc] sm:$0xf] %v304_v4  ;;  %307 = vst [vmem:[%s291_s7 + $0x1c] sm:$0xf] %v305_v5  ;;  %s309_s1 = scalar_lea.sflag [#allocation4], %s970_s26  ;;  %s645_s8 = scalar_lea.vmem %s986_s9, 512 }
  0x82   : > { %p646_p0 = scmp.ne.s32.totalorder %s986_s9, %s645_s8  ;;  %p1068_p7 = scmp.ne.s32.totalorder %s1055_s25, 0 }
  0x83   : > { %s741_s0 = smov [#allocation8]  }
  0x84   : > { %p647_p8 = pnand %p646_p0, %p1068_p7  ;;  %s649_s28 = sshll.u32 %s741_s0, 4  ;;  %s650_s28 = int_to_ptr.vmem [resolvable:$false] %s649_s28 }
  0x85   : > { %s651_s6 = scalar_lea.vmem %s650_s28, 1024  ;;  %p652_p12 = scmp.lt.s32.totalorder %s986_s9, %s650_s28 }
  0x86   : > { %p648_p9 = pneg %p647_p8  ;;  %p653_p1 = scmp.lt.s32.totalorder %s651_s6, %s645_s8 }
  0x88   : > { %p654_p10 = por %p653_p1, %p652_p12 }
  0x8a   : > { %p655_p13 = pnand %p654_p10, %p648_p9 }
  0x8c   : > { %658 = shalt.err (!%p655_p13)
}
  0x8d   : > { %s659_s23 = scalar_lea.hbm %s991_s24, 512  ;;  %s663_s10 = scalar_lea.hbm %s1043_s3, 1024 }
  0x8e   : > { %p660_p11 = scmp.ne.s32.totalorder %s991_s24, %s659_s23  ;;  %p664_p6 = scmp.lt.u32.totalorder %s991_s24, %s1043_s3 }
  0x8f   : > { %p665_p3 = scmp.lt.u32.totalorder %s663_s10, %s659_s23  ;;  %p667_p0 = scmp.lt.u32.totalorder %s659_s23, %s991_s24 }
  0x90   : > { %p661_p5 = pnand %p660_p11, %p1068_p7 }
  0x91   : > { %p666_p2 = por %p665_p3, %p664_p6 }
  0x92   : > { %p662_p4 = pneg %p661_p5 }
  0x93   : > { %p668_p8 = por %p667_p0, %p666_p2 }
  0x95   : > { %p669_p9 = pnand %p668_p8, %p662_p4 }
  0x97   : > { %672 = shalt.err (!%p669_p9)
}
  0x98   : > { %s742_s11 = smov 128   ;;  %s743_s5 = smov 256  }
  0x99   : > { %s744_s4 = smov 8  }
  0x9a   : > { %481 = dma.vmem_to_hbm [thread:$0]  (%p1068_p7), %s986_s9, 512, %s991_s24, %s309_s1, %s742_s11, %s743_s5, %s744_s4  }
  0x9b PF: > { %s339_s7 = sand.u32 1, %s711_s12   ;;  %p1069_p12 = scmp.ne.s32.totalorder %s1057_s27, 0 }
  0x9c   : > { %p1070_p1 = scmp.ge.s32.totalorder %s731_s17, 2  ;;  %s340_s29 = scalar_lea.sflag [#allocation4], %s339_s7 }
  0x9e   : > { %p494_p10 = pnand %p1070_p1, %p1069_p12 }
  0xa0   : > { %706 = dma.done.wait (!%p494_p10), %s340_s29, 512  }
  0xa1   : > { %708 = vsyncadd (!%p494_p10), %s340_s29, 4294966784  ;;  %s22_s17 = sadd.s32 1, %s731_s17   ;;  %s1071_s18 = sld [smem:[#allocation13_spill]] }
  0xa2   : > { %p19_p13 = scmp.ge.s32.totalorder %s22_s17, 4   ;;  %s1072_s25 = sld [smem:[#allocation12_spill]] }
  0xa3   : > { %s1073_s12 = smov %s715_s13  ;;  %s1074_s13 = smov %s719_s14 }
  0xa4   : > { %s1076_s15 = smov %s727_s16  ;;  %21 = sbr.rel (!%p19_p13) target bundleno = 11 (0xb), region = 101 }
  0xa7   : > { %s1075_s14 = smov %s1071_s18 }
  0xa8   : > { %s1077_s16 = smov %s1072_s25 }
  0xab   :  { %345 = vsyncpa [#allocation3], 1 }
  0xac   :  { %347 = vsyncpa [#allocation3 + $0x1], 1 }
  0xad   :  { %348 = vsyncpa [#allocation6], 1 }
  0xae   :  { %350 = vsyncpa [#allocation6 + $0x1], 1 }
  0xaf   :  { %351 = vsyncpa [#allocation4], 1 }
  0xb0   :  { %353 = vsyncpa [#allocation4 + $0x1], 1 }

</bundles_post_ra>
